<compile_context>
chip_gen: v7x
topology: tpu7x:2x2x1
jax: 0.10.0
libtpu: 0.0.40
codegen_flags: <defaults>
</compile_context>

<pallas_src>
import jax
import jax.numpy as jnp
from jax.experimental import pallas as pl
from jax.experimental.pallas import tpu as pltpu


def _copy_kernel(x_ref, o_ref):
    # Pure lane/sublane-dense copy of one block.
    o_ref[...] = x_ref[...]


def _prod(xs):
    p = 1
    for s in xs:
        p *= s
    return p


def _pick_flat_cols(total, itemsize, col_cap_bytes=32 * 1024):
    """Largest multiple-of-128 column count dividing `total` (0 if none)."""
    col_cap = max(col_cap_bytes // itemsize, 128)
    best = 0
    c = 128
    limit = min(col_cap, total)
    while c <= limit:
        if total % c == 0:
            best = c
        c += 128
    return best


def _pick_row_tile(rows, cols, itemsize, block_bytes, min_blocks=4):
    """Rows per block: <= block_bytes, multiple of 8 (or full extent), and
    small enough to give ~min_blocks grid steps for megacore when possible."""
    cap = max((block_bytes // (cols * itemsize)) // 8 * 8, 8)
    if rows >= 8 * min_blocks:
        want = -(-rows // min_blocks)          # ceil(rows / min_blocks)
        want = ((want + 7) // 8) * 8           # round up to sublane multiple
        cap = min(cap, want)
    if cap >= rows:
        return rows                            # full-extent block (always legal)
    return cap


def _pallas_copy_2d(x2, tr, tc, donate=False):
    rows, cols = x2.shape
    grid = (pl.cdiv(rows, tr), pl.cdiv(cols, tc))
    kwargs = {}
    if donate:
        kwargs["input_output_aliases"] = {0: 0}
    return pl.pallas_call(
        _copy_kernel,
        out_shape=jax.ShapeDtypeStruct((rows, cols), x2.dtype),
        grid_spec=pltpu.PrefetchScalarGridSpec(
            num_scalar_prefetch=0,
            grid=grid,
            in_specs=[pl.BlockSpec((tr, tc), lambda i, j: (i, j))],
            out_specs=pl.BlockSpec((tr, tc), lambda i, j: (i, j)),
        ),
        compiler_params=pltpu.CompilerParams(
            dimension_semantics=("parallel", "parallel"),
        ),
        **kwargs,
    )(x2)


def flatten(x: jax.Array, *, use_kernel: bool = False,
            block_bytes: int = 2 * 1024 * 1024, donate: bool = False) -> jax.Array:
    """Pallas equivalent of Flatten.forward: (N, ...) -> (N, prod(rest))."""
    n = x.shape[0]
    d = _prod(x.shape[1:])

    if not use_kernel:
        # Fast path: metadata-only reshape; no HBM traffic at all.
        return jnp.reshape(x, (n, d))

    itemsize = jnp.dtype(x.dtype).itemsize
    total = n * d

    cols = _pick_flat_cols(total, itemsize)
    if cols:
        # Lane-dense (R, C) view of the flat buffer; shape-independent tiling.
        rows = total // cols
        x2 = jnp.reshape(x, (rows, cols))
        tr = _pick_row_tile(rows, cols, itemsize, block_bytes)
        out2 = _pallas_copy_2d(x2, tr, cols, donate=donate)
        return jnp.reshape(out2, (n, d))

    # Fallback: N*D not a multiple of 128 — tile the logical (N, D) view
    # directly; Pallas masks the ragged edge blocks.
    x2 = jnp.reshape(x, (n, d))
    tn = n if n <= 256 else 256
    td = d if d <= 2048 else 2048
    return _pallas_copy_2d(x2, tn, td, donate=donate)


if __name__ == "__main__":
    key = jax.random.PRNGKey(0)

    # Case 1: typical NCHW input (batch=2, channels=4, spatial 16x16).
    x = jax.random.normal(key, (2, 4, 16, 16), dtype=jnp.float32)
    ref = jnp.reshape(x, (x.shape[0], -1))

    out_fast = flatten(x)                       # metadata-only fast path
    out_kern = flatten(x, use_kernel=True)      # Pallas copy path
    jax.block_until_ready(out_kern)
    assert out_fast.shape == (2, 4 * 16 * 16)
    assert out_kern.shape == (2, 4 * 16 * 16)
    assert out_kern.dtype == x.dtype
    assert bool(jnp.array_equal(out_fast, ref))
    assert bool(jnp.array_equal(out_kern, ref))

    # Case 2: larger flat size (exercises the lane-dense (R, C) re-view).
    x2 = jax.random.normal(jax.random.PRNGKey(1), (16, 8, 32, 32), dtype=jnp.float32)
    out2 = flatten(x2, use_kernel=True)
    jax.block_until_ready(out2)
    ref2 = jnp.reshape(x2, (x2.shape[0], -1))
    assert out2.shape == (16, 8 * 32 * 32)
    assert bool(jnp.array_equal(out2, ref2))

    # Case 3: N*D not divisible by 128 (exercises the masked fallback path).
    x3 = jax.random.normal(jax.random.PRNGKey(2), (4, 3, 5, 7), dtype=jnp.float32)
    out3 = flatten(x3, use_kernel=True)
    jax.block_until_ready(out3)
    ref3 = jnp.reshape(x3, (x3.shape[0], -1))
    assert out3.shape == (4, 3 * 5 * 7)
    assert bool(jnp.array_equal(out3, ref3))

    print("KERNEL_OK")
</pallas_src>

<mosaic_0001>
module attributes {stable_mosaic.version = 11 : i64} {
  func.func @_copy_kernel(%arg0: i32, %arg1: i32, %arg2: memref<1x2048xf32, #tpu.memory_space<vmem>>, %arg3: memref<1x2048xf32, #tpu.memory_space<vmem>>) attributes {dimension_semantics = [#tpu.dimension_semantics<parallel>, #tpu.dimension_semantics<parallel>], iteration_bounds = array<i64: 1, 1>, scalar_prefetch = 0 : i64, scratch_operands = 0 : i64, tpu.core_type = #tpu.core_type<tc>, window_params = [{transform_indices = @transform_0, window_bounds = array<i64: 1, 2048>}, {transform_indices = @transform_1, window_bounds = array<i64: 1, 2048>}]} {
    %c0 = arith.constant 0 : index
    %c0_0 = arith.constant 0 : index
    %0 = vector.load %arg2[%c0, %c0_0] : memref<1x2048xf32, #tpu.memory_space<vmem>>, vector<1x2048xf32>
    %c0_1 = arith.constant 0 : index
    %c0_2 = arith.constant 0 : index
    %1 = vector.load %arg3[%c0_1, %c0_2] : memref<1x2048xf32, #tpu.memory_space<vmem>>, vector<1x2048xf32>
    tpu.vector_store %arg3[%c0_1, %c0_2], %0 {strides = array<i32>} : memref<1x2048xf32, #tpu.memory_space<vmem>>, vector<1x2048xf32>,
    return
  }
  func.func @transform_0(%arg0: i32, %arg1: i32) -> (i32, i32) {
    %c0_i32 = arith.constant 0 : i32
    return %arg0, %arg1 : i32, i32
  }
  func.func @transform_1(%arg0: i32, %arg1: i32) -> (i32, i32) {
    %c0_i32 = arith.constant 0 : i32
    return %arg0, %arg1 : i32, i32
  }
}

</mosaic_0001>

<bundles_post_ra>
// kernel: tpu_custom_call.1
= control target key start
LH: loop header
LB: loop body
LE: loop exit
PB: predicated region body
PF: predicated region fallthrough
CT: control target
= control target key end

     0   :  { %6 = vsyncpa [#allocation3], 0  ;;  %s126_s0 = inlined_call_operand.hbm [shape: f32[1,2048], index: 0, kind: input, shape index: {}]   ;;  %s127_s1 = inlined_call_operand.hbm [shape: f32[1,2048], index: 1, kind: output, shape index: {}]  }
   0x1   :  { %7 = vsyncpa [#allocation4], 0  ;;  %s90_s6 = smov [#allocation2]   ;;  %s42_s10 = scalar_lea.hbm %s126_s0, 256 }
   0x2   :  { %s14_s7 = sshll.u32 %s90_s6, 4  ;;  %p43_p0 = scmp.ne.s32.totalorder %s126_s0, %s42_s10  ;;  %s15_s7 = int_to_ptr.vmem [resolvable:$true] %s14_s7 }
   0x3   :  { %p46_p1 = scmp.lt.u32.totalorder %s42_s10, %s126_s0 }
   0x5   :  { %p48_p2 = pnand %p46_p1, %p43_p0 }
   0x7   :  { %51 = shalt.err (!%p48_p2)
}
   0x8   :  { %s52_s15 = scalar_lea.vmem %s15_s7, 256  ;;  %p57_p4 = scmp.lt.s32.totalorder %s15_s7, %s15_s7 }
   0x9   :  { %p53_p3 = scmp.ne.s32.totalorder %s15_s7, %s52_s15  ;;  %p58_p5 = scmp.lt.s32.totalorder %s52_s15, %s52_s15 }
   0xb   :  { %p59_p6 = por %p58_p5, %p57_p4 }
   0xd   :  { %p60_p7 = pnand %p59_p6, %p53_p3 }
   0xf   :  { %63 = shalt.err (!%p60_p7)
}
  0x10   :  { %17 = dma.hbm_to_vmem [thread:$0]  %s126_s0, 256, %s15_s7, [#allocation3]  }
  0x11   :  { %86 = dma.done.wait [#allocation3], 256  }
  0x12   :  { %87 = vsyncadd [#allocation3], 4294967040  ;;  %s91_s18 = smov [#allocation5]   ;;  %v21_v0 = vld [vmem:[#allocation2] sm:$0xff]  ;;  %v22_v1 = vld [vmem:[#allocation2 + $0x8] sm:$0xff] }
  0x13   :  { %s31_s19 = sshll.u32 %s91_s18, 4  ;;  %23 = vst [vmem:[#allocation5] sm:$0xff] %v21_v0  ;;  %24 = vst [vmem:[#allocation5 + $0x8] sm:$0xff] %v22_v1  ;;  %s32_s19 = int_to_ptr.vmem [resolvable:$true] %s31_s19 }
  0x14   :  { %s64_s20 = scalar_lea.vmem %s32_s19, 256  ;;  %p69_p9 = scmp.lt.s32.totalorder %s32_s19, %s32_s19 }
  0x15   :  { %p65_p8 = scmp.ne.s32.totalorder %s32_s19, %s64_s20  ;;  %p70_p10 = scmp.lt.s32.totalorder %s64_s20, %s64_s20 }
  0x17   :  { %p71_p11 = por %p70_p10, %p69_p9 }
  0x19   :  { %p72_p12 = pnand %p71_p11, %p65_p8 }
  0x1b   :  { %75 = shalt.err (!%p72_p12)
}
  0x1c   :  { %s76_s0 = scalar_lea.hbm %s127_s1, 256 }
  0x1d   :  { %p77_p13 = scmp.ne.s32.totalorder %s127_s1, %s76_s0  ;;  %p80_p0 = scmp.lt.u32.totalorder %s76_s0, %s127_s1 }
  0x1f   :  { %p82_p1 = pnand %p80_p0, %p77_p13 }
  0x21   :  { %85 = shalt.err (!%p82_p1)
}
  0x22   :  { %34 = dma.vmem_to_hbm [thread:$0]  %s32_s19, 256, %s127_s1, [#allocation4]  }
  0x23   :  { %88 = dma.done.wait [#allocation4], 256  }
  0x24   :  { %89 = vsyncadd [#allocation4], 4294967040 }
  0x25   :  { %38 = vsyncpa [#allocation3], 1 }
  0x26   :  { %39 = vsyncpa [#allocation4], 1 }

</bundles_post_ra>
